<compile_context>
chip_gen: v7x
topology: tpu7x:2x2x1
jax: 0.10.0
libtpu: 0.0.40
codegen_flags: <defaults>
</compile_context>

<pallas_src>
import math
import functools

import numpy as np
import jax
import jax.numpy as jnp
from jax.experimental import pallas as pl
from jax.experimental.pallas import tpu as pltpu


_MAX_TILE_ROWS = 1024               # row cap per output block
_MAX_TILE_BYTES = 4 * 1024 * 1024   # keep each output tile <= ~4 MiB (v7x-safe)


def _sinusoidal_kernel(inv_freq_ref, o_ref, *, embedding_dim: int,
                       padding_idx, split_store: bool):
    """Writes one (tile_s, embedding_dim) block of the sinusoidal table."""
    tile_s = o_ref.shape[0]
    half_dim = inv_freq_ref.shape[-1]

    # Absolute row (position) index of the first row of this block.
    row0 = pl.program_id(0) * tile_s

    # Positions over the half-width slab only (half the VPU/EUP work).
    pos_i = jax.lax.broadcasted_iota(jnp.int32, (tile_s, half_dim), 0) + row0
    angle = pos_i.astype(jnp.float32) * inv_freq_ref[...]   # (tile_s, half_dim)

    if split_store:
        # half_dim % 128 == 0 -> both half-width stores are lane-aligned.
        o_ref[:, :half_dim] = jnp.sin(angle)
        o_ref[:, half_dim:] = jnp.cos(angle)
    else:
        parts = [jnp.sin(angle), jnp.cos(angle)]
        if embedding_dim % 2 == 1:
            # Odd dim: final zero column, appended once (no full-tile select).
            parts.append(jnp.zeros((tile_s, 1), jnp.float32))
        o_ref[...] = jnp.concatenate(parts, axis=-1)

    if padding_idx is not None:
        # Zero the padding row only inside the tile that actually contains it
        # (absolute-index guard, so the last partial tile is handled too).
        @pl.when((padding_idx >= row0) & (padding_idx < row0 + tile_s))
        def _():
            o_ref[pl.ds(padding_idx - row0, 1), :] = jnp.zeros(
                (1, embedding_dim), o_ref.dtype)


@functools.lru_cache(maxsize=None)
def _build_table(seq_len: int, embedding_dim: int, padding_idx):
    """Builds the (seq_len, embedding_dim) float32 table once per shape."""
    half_dim = embedding_dim // 2
    # NOTE: embedding_dim in {2, 3} divides by zero here, exactly like the
    # PyTorch reference; callers must use embedding_dim >= 4.
    scale = math.log(10000.0) / (half_dim - 1)
    # inv_freq is a compile-time constant -> no exp on the EUP in the kernel.
    inv_freq = jnp.asarray(
        np.exp(np.arange(half_dim, dtype=np.float32) * -scale)[None, :])

    # Row tiling: biggest tile that keeps one block <= ~4 MiB and <= 1024 rows.
    row_bytes = embedding_dim * 4
    cap = max(8, min(_MAX_TILE_ROWS, (_MAX_TILE_BYTES // row_bytes) // 8 * 8))
    tile_s = seq_len if seq_len <= cap else cap      # cap is a multiple of 8
    grid = (pl.cdiv(seq_len, tile_s),)

    split_store = (embedding_dim % 2 == 0) and (half_dim % 128 == 0)

    kernel = functools.partial(
        _sinusoidal_kernel,
        embedding_dim=embedding_dim,
        padding_idx=padding_idx,
        split_store=split_store,
    )

    return pl.pallas_call(
        kernel,
        out_shape=jax.ShapeDtypeStruct((seq_len, embedding_dim), jnp.float32),
        grid=grid,
        in_specs=[pl.BlockSpec((1, half_dim), lambda i: (0, 0))],
        out_specs=pl.BlockSpec((tile_s, embedding_dim), lambda i: (i, 0)),
        compiler_params=pltpu.CompilerParams(
            dimension_semantics=("parallel",)),
    )(inv_freq)


def sinusoidal_positional_embedding(x, *, embedding_dim: int, padding_idx):
    """Mirror of SinusoidalPositionalEmbedding.forward.

    x: (bsz, seq_len, _)  -- only seq_len is used.
    returns: (1, seq_len, embedding_dim) float32
    """
    _, seq_len, _ = x.shape
    table = _build_table(int(seq_len), int(embedding_dim), padding_idx)
    return table[None, :, :]   # unsqueeze(0)


def _reference_numpy(seq_len, embedding_dim, padding_idx):
    half_dim = embedding_dim // 2
    emb = math.log(10000.0) / (half_dim - 1)
    emb = np.exp(np.arange(half_dim, dtype=np.float32) * -emb)
    emb = np.arange(seq_len, dtype=np.float32)[:, None] * emb[None, :]
    emb = np.concatenate([np.sin(emb), np.cos(emb)], axis=1).reshape(seq_len, -1)
    if embedding_dim % 2 == 1:
        emb = np.concatenate([emb, np.zeros((seq_len, 1), np.float32)], axis=1)
    if padding_idx is not None and padding_idx < seq_len:
        emb[padding_idx, :] = 0
    return emb[None]


if __name__ == "__main__":
    bsz, seq_len, feat = 2, 8, 32
    embedding_dim = 32
    padding_idx = 0

    key = jax.random.PRNGKey(0)
    x = jax.random.normal(key, (bsz, seq_len, feat), dtype=jnp.float32)

    out = sinusoidal_positional_embedding(
        x, embedding_dim=embedding_dim, padding_idx=padding_idx)
    out = jax.block_until_ready(out)

    ref = _reference_numpy(seq_len, embedding_dim, padding_idx)
    assert out.shape == (1, seq_len, embedding_dim), out.shape
    np.testing.assert_allclose(np.asarray(out), ref, rtol=1e-5, atol=1e-5)

    # Also exercise a multi-tile / odd-dim / partial-last-tile configuration.
    seq_len2, dim2, pad2 = 2050, 33, 5
    x2 = jnp.zeros((1, seq_len2, 4), jnp.float32)
    out2 = jax.block_until_ready(
        sinusoidal_positional_embedding(x2, embedding_dim=dim2, padding_idx=pad2))
    ref2 = _reference_numpy(seq_len2, dim2, pad2)
    np.testing.assert_allclose(np.asarray(out2), ref2, rtol=1e-5, atol=1e-5)

    print("KERNEL_OK")
</pallas_src>

<mosaic_0001>
module attributes {stable_mosaic.version = 11 : i64} {
  func.func @_sinusoidal_kernel(%arg0: i32, %arg1: memref<1x16xf32, #tpu.memory_space<vmem>>, %arg2: memref<8x32xf32, #tpu.memory_space<vmem>>) attributes {dimension_semantics = [#tpu.dimension_semantics<parallel>], iteration_bounds = array<i64: 1>, scalar_prefetch = 0 : i64, scratch_operands = 0 : i64, tpu.core_type = #tpu.core_type<tc>, window_params = [{pipeline_mode = #tpu.pipeline_mode<synchronous>, transform_indices = @transform_0, window_bounds = array<i64: 1, 16>}, {transform_indices = @transform_1, window_bounds = array<i64: 8, 32>}]} {
    %c8_i32 = arith.constant 8 : i32
    %0 = arith.muli %arg0, %c8_i32 : i32
    %1 = tpu.iota {dimensions = array<i32: 0>} : vector<8x16xi32>
    %2 = vector.broadcast %0 : i32 to vector<8x16xi32>
    %3 = arith.addi %1, %2 : vector<8x16xi32>
    %4 = arith.sitofp %3 : vector<8x16xi32> to vector<8x16xf32>
    %c0 = arith.constant 0 : index
    %c0_0 = arith.constant 0 : index
    %5 = vector.load %arg1[%c0, %c0_0] : memref<1x16xf32, #tpu.memory_space<vmem>>, vector<1x16xf32>
    %6 = vector.broadcast %5 : vector<1x16xf32> to vector<8x16xf32>
    %7 = arith.mulf %4, %6 : vector<8x16xf32>
    %8 = math.sin %7 : vector<8x16xf32>
    %9 = math.cos %7 : vector<8x16xf32>
    %10 = tpu.concatenate %8, %9 in 1 : vector<8x16xf32>, vector<8x16xf32> -> vector<8x32xf32>
    %c0_1 = arith.constant 0 : index
    %c0_2 = arith.constant 0 : index
    %11 = vector.load %arg2[%c0_1, %c0_2] : memref<8x32xf32, #tpu.memory_space<vmem>>, vector<8x32xf32>
    tpu.vector_store %arg2[%c0_1, %c0_2], %10 {strides = array<i32>} : memref<8x32xf32, #tpu.memory_space<vmem>>, vector<8x32xf32>,
    %c0_i32 = arith.constant 0 : i32
    %12 = arith.cmpi sle, %0, %c0_i32 : i32
    %c8_i32_3 = arith.constant 8 : i32
    %13 = arith.addi %0, %c8_i32_3 : i32
    %c0_i32_4 = arith.constant 0 : i32
    %14 = arith.cmpi sgt, %13, %c0_i32_4 : i32
    %15 = arith.andi %12, %14 : i1
    %16 = arith.extui %15 : i1 to i32
    %c0_i32_5 = arith.constant 0 : i32
    %17 = arith.cmpi ne, %16, %c0_i32_5 : i32
    scf.if %17 {
      %cst = arith.constant 0.000000e+00 : f32
      %18 = vector.broadcast %cst : f32 to vector<1x32xf32>
      %c0_i32_6 = arith.constant 0 : i32
      %19 = arith.subi %c0_i32_6, %0 : i32
      %20 = arith.index_cast %19 : i32 to index
      %c0_7 = arith.constant 0 : index
      %21 = vector.load %arg2[%20, %c0_7] : memref<8x32xf32, #tpu.memory_space<vmem>>, vector<1x32xf32>
      tpu.vector_store %arg2[%20, %c0_7], %18 {strides = array<i32>} : memref<8x32xf32, #tpu.memory_space<vmem>>, vector<1x32xf32>,
    } else {
    }
    return
  }
  func.func @transform_0(%arg0: i32) -> (i32, i32) {
    %c0_i32 = arith.constant 0 : i32
    %c0_i32_0 = arith.constant 0 : i32
    %c0_i32_1 = arith.constant 0 : i32
    return %c0_i32, %c0_i32_0 : i32, i32
  }
  func.func @transform_1(%arg0: i32) -> (i32, i32) {
    %c0_i32 = arith.constant 0 : i32
    %c0_i32_0 = arith.constant 0 : i32
    return %arg0, %c0_i32 : i32, i32
  }
}

</mosaic_0001>

<bundles_post_ra>
// kernel: tpu_custom_call.1
= control target key start
LH: loop header
LB: loop body
LE: loop exit
PB: predicated region body
PF: predicated region fallthrough
CT: control target
= control target key end

     0   :  { %6 = vsyncpa [#allocation3], 0  ;;  %s417_s0 = inlined_call_operand.hbm [shape: f32[1,16], index: 0, kind: input, shape index: {}]   ;;  %s418_s1 = inlined_call_operand.hbm [shape: f32[8,32], index: 1, kind: output, shape index: {}]  }
   0x1   :  { %7 = vsyncpa [#allocation4], 0  ;;  %s352_s6 = smov [#allocation2]   ;;  %s304_s10 = scalar_lea.hbm %s417_s0, 16 }
   0x2   :  { %s14_s7 = sshll.u32 %s352_s6, 4  ;;  %p305_p0 = scmp.ne.s32.totalorder %s417_s0, %s304_s10  ;;  %s15_s7 = int_to_ptr.vmem [resolvable:$true] %s14_s7 }
   0x3   :  { %p308_p1 = scmp.lt.u32.totalorder %s304_s10, %s417_s0 }
   0x5   :  { %p310_p2 = pnand %p308_p1, %p305_p0 }
   0x7   :  { %313 = shalt.err (!%p310_p2)
}
   0x8   :  { %s314_s15 = scalar_lea.vmem %s15_s7, 16  ;;  %s318_s16 = scalar_lea.vmem %s15_s7, 32 }
   0x9   :  { %p315_p3 = scmp.ne.s32.totalorder %s15_s7, %s314_s15  ;;  %p319_p4 = scmp.lt.s32.totalorder %s15_s7, %s15_s7 }
   0xa   :  { %p320_p5 = scmp.lt.s32.totalorder %s318_s16, %s314_s15 }
   0xc   :  { %p321_p6 = por %p320_p5, %p319_p4 }
   0xe   :  { %p322_p7 = pnand %p321_p6, %p315_p3 }
  0x10   :  { %325 = shalt.err (!%p322_p7)
}
  0x11   :  { %17 = dma.hbm_to_vmem [thread:$0]  %s417_s0, 16, %s15_s7, [#allocation3]  }
  0x12   :  { %348 = dma.done.wait [#allocation3], 16  }
  0x13   :  { %349 = vsyncadd [#allocation3], 4294967280  ;;  %v22_v0 = vlaneseq  ;;  %v277_v3 = vld [vmem:[#allocation2] ss:$0 sm:$0xff]  ;;  %v353_v16 = vmov 683565275  }
  0x14   :  { %v354_v18 = vmov 2475754826   ;;  %v355_v20 = vmov 2131351028   ;;  %v356_v22 = vmov 2102212464  }
  0x15   :  { %v23_v1 = vshrl.u32 %v22_v0, 7  ;;  %v357_v24 = vmov 920167782   ;;  %v358_v31 = vmov 1326507024   ;;  %s359_s0 = smov 16  }
  0x16   :  { %s360_s19 = smov [#allocation5]  }
  0x17   :  { %v26_v2 = vcvt.s32.f32 %v23_v1  ;;  %s267_s20 = sshll.u32 %s360_s19, 4  ;;  %s268_s20 = int_to_ptr.vmem [resolvable:$true] %s267_s20 }
  0x18   :  { %s326_s21 = scalar_lea.vmem %s268_s20, 128  ;;  %p331_p9 = scmp.lt.s32.totalorder %s268_s20, %s268_s20 }
  0x19   :  { %v384_v4 = vmul.f32 %v277_v3, %v26_v2  ;;  %p327_p8 = scmp.ne.s32.totalorder %s268_s20, %s326_s21  ;;  %p332_p10 = scmp.lt.s32.totalorder %s326_s21, %s326_s21 }
  0x1b   :  { %v38_v5 = vand.u32 2139095040, %v384_v4  ;;  %v35_v7 = vand.u32 2147483647, %v384_v4  ;;  %vm37_vm7 = vcmp.lt.s32.totalorder %v384_v4, 0  ;;  %vm127_vm15 = vweird.f32 %v384_v4  ;;  %p333_p11 = por %p332_p10, %p331_p9 }
  0x1d   :  { %v39_v6 = vshrl.u32 %v38_v5, 23  ;;  %v42_v10 = vand.u32 8388607, %v35_v7  ;;  %vm36_vm8 = vcmp.le.f32.partialorder %v35_v7, 0.7853982  ;;  %p334_p12 = pnand %p333_p11, %p327_p8 }
  0x1f   :  { %v278_v8 = vadd.s32 4294967169, %v39_v6  ;;  %v43_v13 = vor.u32 8388608, %v42_v10 }
  0x21   :  { %v45_v9 = vadd.s32 1, %v278_v8  ;;  %v83_v33 = vshll.u32 %v43_v13, 8 }
  0x23   :  { %vm46_vm0 = vcmp.gt.s32.totalorder %v45_v9, 0 }
  0x24   :  { %v47_v11 = vsel %vm46_vm0, %v45_v9, 0  ;;  %vm246_vm0 = vcmask 130048  }
  0x25   :  { %v49_v12 = vand.u32 31, %v47_v11  ;;  %v48_v14 = vshrl.u32 %v47_v11, 5 }
  0x27   :  { %v50_v15 = vsub.s32 32, %v49_v12  ;;  %v52_v17 = vshll.u32 %v353_v16, %v49_v12  ;;  %v55_v19 = vshll.u32 %v354_v18, %v49_v12  ;;  %v58_v21 = vshll.u32 %v355_v20, %v49_v12 }
  0x28   :  { %v61_v23 = vshll.u32 %v356_v22, %v49_v12  ;;  %v64_v25 = vshll.u32 %v357_v24, %v49_v12  ;;  %vm67_vm1 = vcmp.lt.s32.totalorder %v48_v14, 1  ;;  %vm70_vm2 = vcmp.lt.s32.totalorder %v48_v14, 4 }
  0x29   :  { %v51_v26 = vshrl.u32 %v353_v16, %v50_v15  ;;  %v53_v27 = vshrl.u32 %v354_v18, %v50_v15  ;;  %v56_v28 = vshrl.u32 %v355_v20, %v50_v15  ;;  %v59_v29 = vshrl.u32 %v356_v22, %v50_v15 }
  0x2a   :  { %v62_v30 = vshrl.u32 %v357_v24, %v50_v15  ;;  %v65_v32 = vshrl.u32 %v358_v31, %v50_v15  ;;  %vm68_vm3 = vcmp.lt.s32.totalorder %v48_v14, 2  ;;  %vm69_vm4 = vcmp.lt.s32.totalorder %v48_v14, 3 }
  0x2b   :  { %v54_v34 = vor.u32 %v53_v27, %v52_v17  ;;  %v57_v35 = vor.u32 %v56_v28, %v55_v19  ;;  %v60_v36 = vor.u32 %v59_v29, %v58_v21 }
  0x2c   :  { %v63_v37 = vor.u32 %v62_v30, %v61_v23  ;;  %v66_v38 = vor.u32 %v65_v32, %v64_v25 }
  0x2d   :  { %v71_v39 = vsel %vm67_vm1, %v51_v26, %v54_v34  ;;  %v72_v40 = vsel %vm70_vm2, %v60_v36, 2102212464  ;;  %v75_v41 = vsel %vm67_vm1, %v54_v34, %v57_v35  ;;  %v79_v42 = vsel %vm67_vm1, %v57_v35, %v60_v36 }
  0x2e   :  { %v73_v43 = vsel %vm69_vm4, %v57_v35, %v72_v40  ;;  %v76_v44 = vsel %vm70_vm2, %v63_v37, 920167782  ;;  %v80_v45 = vsel %vm70_vm2, %v66_v38, 1326507024  ;;  %vm248_vm1 = vcmask 261120  }
  0x2f   :  { %v77_v46 = vsel %vm69_vm4, %v60_v36, %v76_v44  ;;  %v81_v47 = vsel %vm69_vm4, %v63_v37, %v80_v45  ;;  %v74_v48 = vsel %vm68_vm3, %v71_v39, %v73_v43  ;;  %vm259_vm2 = vcmask 253952  }
  0x30   :  { %v78_v49 = vsel %vm68_vm3, %v75_v41, %v77_v46  ;;  %v82_v50 = vsel %vm68_vm3, %v79_v42, %v81_v47  ;;  %v90_v55 = vmul.u32 %v83_v33, %v74_v48 }
  0x31   :  { %v390_v51 = vmul.u32.u64.low %v83_v33, %v82_v50  ;;  %v391_v52 = vmul.u32.u64.high %v83_v33, %v82_v50, %v390_v51  ;;  %v393_v53 = vmul.u32.u64.low %v83_v33, %v78_v49  ;;  %v394_v54 = vmul.u32.u64.high %v83_v33, %v78_v49, %v393_v53 }
  0x33   :  { %vm92_vm5 = vc.u32 %v391_v52, %v393_v53  ;;  %v93_v56 = vadd.s32 1, %v394_v54  ;;  %v91_v3 = vadd.s32 %v393_v53, %v391_v52 }
  0x35   :  { %v94_v57 = vsel %vm92_vm5, %v93_v56, %v394_v54 }
  0x36   :  { %v95_v58 = vadd.s32 %v94_v57, %v90_v55 }
  0x38   :  { %v96_v59 = vadd.s32 536870912, %v95_v58 }
  0x3a   :  { %v97_v60 = vshrl.u32 %v96_v59, 30 }
  0x3c   :  { %v98_v61 = vshll.u32 %v97_v60, 30  ;;  %v121_v18 = vsub.s32 4, %v97_v60 }
  0x3e   :  { %v99_v62 = vsub.s32 %v95_v58, %v98_v61  ;;  %v122_v21 = vsel %vm37_vm7, %v121_v18, %v97_v60 }
  0x3f   :  { %v124_v23 = vsel %vm36_vm8, 0, %v122_v21 }
  0x40   :  { %v101_v63 = vsub.s32 0, %v99_v62  ;;  %v128_v24 = vadd.s32 3, %v124_v23  ;;  %v232_v26 = vand.u32 3, %v124_v23 }
  0x42   :  { %v279_v0 = vmin.u32 %v101_v63, %v99_v62  ;;  %v129_v25 = vand.u32 3, %v128_v24  ;;  %vm237_vm10 = vcmp.eq.s32.totalorder %v232_v26, 2  ;;  %vm234_vm12 = vcmp.eq.s32.totalorder %v232_v26, 0 }
  0x43   :  { %vm233_vm14 = vcmp.lt.s32.totalorder %v232_v26, 2 }
  0x44   :  { %v103_v1 = vclz %v279_v0  ;;  %vm134_vm9 = vcmp.eq.s32.totalorder %v129_v25, 2  ;;  %vm131_vm11 = vcmp.eq.s32.totalorder %v129_v25, 0  ;;  %vm130_vm13 = vcmp.lt.s32.totalorder %v129_v25, 2 }
  0x46   :  { %v280_v2 = vadd.s32 4294967294, %v103_v1 }
  0x48   :  { %vm281_vm6 = vcmp.lt.s32.totalorder %v280_v2, 0 }
  0x49   :  { %v106_v5 = vsel %vm281_vm6, 0, %v280_v2 }
  0x4a   :  { %v107_v6 = vsub.s32 32, %v106_v5  ;;  %v108_v8 = vshll.u32 %v99_v62, %v106_v5  ;;  %v111_v9 = vsub.s32 4294967266, %v106_v5 }
  0x4c   :  { %v109_v10 = vshrl.u32 %v91_v3, %v107_v6  ;;  %v112_v11 = vadd.s32 127, %v111_v9 }
  0x4e   :  { %v110_v12 = vor.u32 %v109_v10, %v108_v8  ;;  %v113_v13 = vshll.u32 %v112_v11, 23 }
  0x50   :  { %v114_v14 = vor.u32 4788187, %v113_v13  ;;  %v117_v15 = vcvt.s32.f32 %v110_v12 }
  0x52   :  { %v115_v16 = vand.u32 2147483647, %v114_v14 }
  0x54   :  { %v118_v17 = vmul.f32 %v117_v15, %v115_v16 }
  0x56   :  { %v119_v19 = vxor.u32 2147483648, %v118_v17 }
  0x58   :  { %v120_v20 = vsel %vm37_vm7, %v119_v19, %v118_v17 }
  0x59   :  { %v123_v22 = vsel %vm36_vm8, %v384_v4, %v120_v20  ;;  %v361_v4 = vmov 0.0  }
  0x5a   :  { %300 = vcosq.f32 %v123_v22 }
  0x5b   :  { %302 = vsinq.f32 %v123_v22 }
  0x64   :  { %v301_v27 = vpop.eup %300 }
  0x65   :  { %v303_v28 = vpop.eup %302  ;;  %v135_v29 = vxor.u32 2147483648, %v301_v27 }
  0x66   :  { %v132_v7 = vxor.u32 2147483648, %v303_v28 }
  0x67   :  { %v136_v30 = vsel %vm134_vm9, %v135_v29, %v303_v28  ;;  %v239_v31 = vsel %vm237_vm10, %v135_v29, %v303_v28 }
  0x68   :  { %v133_v32 = vsel %vm131_vm11, %v301_v27, %v132_v7  ;;  %v236_v33 = vsel %vm234_vm12, %v301_v27, %v132_v7 }
  0x69   :  { %v137_v34 = vsel %vm130_vm13, %v133_v32, %v136_v30  ;;  %v240_v35 = vsel %vm233_vm14, %v236_v33, %v239_v31 }
  0x6a   :  { %v138_v36 = vsel %vm127_vm15, nan, %v137_v34  ;;  %v241_v37 = vsel %vm127_vm15, nan, %v240_v35 }
  0x6b   :  { %243 = vrot.lane.b32.xlu0 %v241_v37, %s359_s0 }
  0xdd   :  { %v244_v38 = vpop.permute.xlu0 %243 }
  0xde   :  { %v247_v39 = vsel %vm246_vm0, %v138_v36, %v244_v38 }
  0xdf   :  { %249 = vst.msk [vmem:[#allocation5] sm:$0xff] %vm248_vm1, %v247_v39 }
  0xe0   :  { %260 = vst.msk [vmem:[#allocation5] sm:$0x1] %vm259_vm2, %v361_v4 }
  0xe1   :  { %337 = shalt.err (!%p334_p12)
}
  0xe2   :  { %s338_s24 = scalar_lea.hbm %s418_s1, 128 }
  0xe3   :  { %p339_p13 = scmp.ne.s32.totalorder %s418_s1, %s338_s24  ;;  %p342_p0 = scmp.lt.u32.totalorder %s338_s24, %s418_s1 }
  0xe5   :  { %p344_p1 = pnand %p342_p0, %p339_p13 }
  0xe7   :  { %347 = shalt.err (!%p344_p1)
}
  0xe8   :  { %270 = dma.vmem_to_hbm [thread:$0]  %s268_s20, 128, %s418_s1, [#allocation4]  }
  0xe9   :  { %350 = dma.done.wait [#allocation4], 128  }
  0xea   :  { %351 = vsyncadd [#allocation4], 4294967168 }
  0xeb   :  { %274 = vsyncpa [#allocation3], 1 }
  0xec   :  { %275 = vsyncpa [#allocation4], 1 }

</bundles_post_ra>
